<compile_context>
chip_gen: v6e
topology: v6e:2x2x1
jax: 0.10.0
libtpu: 0.0.40
codegen_flags: <defaults>
</compile_context>

<pallas_src>
import functools

import jax
import jax.numpy as jnp
from jax.experimental import pallas as pl
from jax.experimental.pallas import tpu as pltpu

LN_EPS = 1e-5   # torch.nn.LayerNorm default eps
BN_EPS = 1e-5   # torch.nn.BatchNorm1d default eps

GNN_DIM = 384
HIDDEN_DIMS = [512, 256, 128]
NUM_CLASSES = 2
LOGIT_PAD = 128   # lane-dense padded classifier width


# --------------------------------------------------------------------------- #
# Kernel
# --------------------------------------------------------------------------- #
def gnn_only_kernel(
    x_ref,
    ln_g_ref, ln_b_ref,
    w1_ref, b1_ref,
    w2_ref, b2_ref,
    w3_ref, b3_ref,
    w4_ref, b4_ref,
    out_ref,
    *, bf16_epilogue: bool,
):
    # ---- input LayerNorm over the feature axis (f32 math, biased variance) ----
    x = x_ref[...].astype(jnp.float32)
    mu = jnp.mean(x, axis=-1, keepdims=True)
    xc = x - mu
    var = jnp.mean(xc * xc, axis=-1, keepdims=True)
    x = xc * jax.lax.rsqrt(var + LN_EPS)
    x = x * ln_g_ref[...] + ln_b_ref[...]
    h = x.astype(jnp.bfloat16)          # MXU operand dtype

    def hidden_block(h_bf16, w_ref, b_ref):
        # Linear + folded eval-mode BatchNorm: bf16 MXU matmul, f32 accumulation.
        acc = jnp.dot(h_bf16, w_ref[...], preferred_element_type=jnp.float32)
        if bf16_epilogue:
            # v6e/v7x: cast once right after the dot; bias + ReLU in bf16.
            acc = acc.astype(jnp.bfloat16) + b_ref[...].astype(jnp.bfloat16)
            return jnp.maximum(acc, 0.0)                       # bf16
        # v5e (no bf16 VPU): keep the f32 epilogue, cast once for the next dot.
        acc = acc + b_ref[...]
        return jnp.maximum(acc, 0.0).astype(jnp.bfloat16)

    h = hidden_block(h, w1_ref, b1_ref)
    h = hidden_block(h, w2_ref, b2_ref)
    h = hidden_block(h, w3_ref, b3_ref)

    # Final classifier Linear(128 -> 2), zero-padded to 128 lanes so the HBM
    # writeback is a lane-dense unmasked store; the wrapper slices [:, :2].
    logits = jnp.dot(h, w4_ref[...], preferred_element_type=jnp.float32)
    logits = logits + b4_ref[...]
    out_ref[...] = logits.astype(out_ref.dtype)


# --------------------------------------------------------------------------- #
# Wrapper
# --------------------------------------------------------------------------- #
def _round_up(n, m):
    return -(-n // m) * m


def _choose_tile(batch, tb):
    """Batch tile: multiple of 16, no larger than the (rounded) batch, and an
    even number of >= 2 grid steps whenever there is more than one tile of
    work (so the "parallel" batch axis load-balances v7x's two TensorCores)."""
    tb = _round_up(max(16, min(tb, _round_up(batch, 16))), 16)
    n_steps = -(-batch // tb)
    if n_steps > 1 and n_steps % 2 == 1:
        tb = _round_up(-(-batch // (n_steps + 1)), 16)
    return tb


def _has_bf16_vpu():
    # v6e / v7x VPUs have bf16 VALUs; v5e and older do not -> f32 epilogue there.
    kind = jax.devices()[0].device_kind.lower()
    return not any(v in kind for v in ("v2", "v3", "v4", "v5"))


@functools.partial(jax.jit, static_argnames=("tb", "bf16_epilogue"))
def gnn_only_forward(x, kparams, tb=1024, bf16_epilogue=None):
    """x: (B, 384) float32/bfloat16.  kparams: output of fold_kernel_params().

    Returns (B, 2) float32 logits.
    """
    if bf16_epilogue is None:
        bf16_epilogue = _has_bf16_vpu()

    B = x.shape[0]
    tb_eff = _choose_tile(B, tb)
    n_steps = pl.cdiv(B, tb_eff)

    # Stream the activation in bf16 (largest per-step HBM transfer); LN
    # upcasts to f32 inside the kernel.
    if x.dtype != jnp.bfloat16:
        x = x.astype(jnp.bfloat16)

    (ln_g, ln_b, w1, b1, w2, b2, w3, b3, w4p, b4p) = kparams

    def const_spec(arr):   # full array, VMEM-resident across all grid steps
        return pl.BlockSpec(arr.shape, lambda i: (0, 0))

    # Scoped-VMEM budget: double-buffered activation/output blocks + resident
    # weights (2 buffers each) + headroom for compiler-managed f32 intermediates.
    weight_bytes = sum(int(p.size) * p.dtype.itemsize for p in kparams)
    est = (2 * tb_eff * GNN_DIM * 2          # x blocks (bf16, double-buffered)
           + 2 * tb_eff * LOGIT_PAD * 2      # out blocks (bf16, double-buffered)
           + 2 * weight_bytes                # resident weights/biases
           + 8 * tb_eff * max(HIDDEN_DIMS) * 4)   # intermediate headroom
    vmem_limit = int(min(64 << 20, max(32 << 20, est)))

    # Note: weight specs could be single-buffered (pipeline_mode=pl.Buffered(1))
    # to trim ~0.8 MiB of resident VMEM, and the x spec could use Buffered(3)
    # on v5e if the input DMA is exposed — both intentionally skipped here as
    # negligible at this footprint.
    out_padded = pl.pallas_call(
        functools.partial(gnn_only_kernel, bf16_epilogue=bool(bf16_epilogue)),
        out_shape=jax.ShapeDtypeStruct((B, LOGIT_PAD), jnp.bfloat16),
        grid=(n_steps,),
        in_specs=[
            pl.BlockSpec((tb_eff, GNN_DIM), lambda i: (i, 0)),
            const_spec(ln_g), const_spec(ln_b),
            const_spec(w1), const_spec(b1),
            const_spec(w2), const_spec(b2),
            const_spec(w3), const_spec(b3),
            const_spec(w4p), const_spec(b4p),
        ],
        out_specs=pl.BlockSpec((tb_eff, LOGIT_PAD), lambda i: (i, 0)),
        compiler_params=pltpu.CompilerParams(
            dimension_semantics=("parallel",),
            vmem_limit_bytes=vmem_limit),
    )(x, ln_g, ln_b, w1, b1, w2, b2, w3, b3, w4p, b4p)

    return out_padded[:, :NUM_CLASSES].astype(jnp.float32)


# --------------------------------------------------------------------------- #
# Parameters
# --------------------------------------------------------------------------- #
def init_params(key):
    """Deterministic synthetic module-shaped parameters (raw, unfolded)."""
    dims = [GNN_DIM] + HIDDEN_DIMS  # 384, 512, 256, 128
    params = []

    # LayerNorm(384): gamma=1, beta=0 (fresh-init), carried as (1, D) rows.
    params.append(jnp.ones((1, GNN_DIM), jnp.float32))   # ln gamma
    params.append(jnp.zeros((1, GNN_DIM), jnp.float32))  # ln beta

    for i in range(len(HIDDEN_DIMS)):
        din, dout = dims[i], dims[i + 1]
        key, kw, kb = jax.random.split(key, 3)
        scale = 1.0 / jnp.sqrt(jnp.float32(din))
        w = jax.random.uniform(kw, (din, dout), jnp.float32, -scale, scale)
        b = jax.random.uniform(kb, (1, dout), jnp.float32, -scale, scale)
        params.extend([
            w, b,
            jnp.ones((1, dout), jnp.float32),   # BN gamma
            jnp.zeros((1, dout), jnp.float32),  # BN beta
            jnp.zeros((1, dout), jnp.float32),  # BN running_mean
            jnp.ones((1, dout), jnp.float32),   # BN running_var
        ])

    # final Linear(128 -> 2)
    key, kw, kb = jax.random.split(key, 3)
    scale = 1.0 / jnp.sqrt(jnp.float32(dims[-1]))
    w4 = jax.random.uniform(kw, (dims[-1], NUM_CLASSES), jnp.float32, -scale, scale)
    b4 = jax.random.uniform(kb, (1, NUM_CLASSES), jnp.float32, -scale, scale)
    params.extend([w4, b4])
    return params


def fold_kernel_params(raw):
    """Fold eval-mode BN into the Linear weights and pre-cast weights to bf16.

    W' = W * (g * rsqrt(v+eps)),  b' = (b - m) * (g * rsqrt(v+eps)) + beta.
    The final classifier is zero-padded to 128 output lanes for lane-dense stores.
    Biases stay f32 (the kernel downcasts them when using the bf16 epilogue).
    """
    (ln_g, ln_b,
     w1, b1, g1, be1, m1, v1,
     w2, b2, g2, be2, m2, v2,
     w3, b3, g3, be3, m3, v3,
     w4, b4) = raw

    def fold(w, b, g, be, m, v):
        s = g * jax.lax.rsqrt(v + BN_EPS)           # (1, Dout)
        w_f = (w * s).astype(jnp.bfloat16)          # fold BN scale into columns
        b_f = (b - m) * s + be                      # f32 bias
        return w_f, b_f

    w1f, b1f = fold(w1, b1, g1, be1, m1, v1)
    w2f, b2f = fold(w2, b2, g2, be2, m2, v2)
    w3f, b3f = fold(w3, b3, g3, be3, m3, v3)

    # Optional v7x-only follow-up: fp8-quantize w1 (per-column scale folded
    # like the BN scale) once the accuracy budget is confirmed.
    w4p = jnp.zeros((HIDDEN_DIMS[-1], LOGIT_PAD), jnp.float32)
    w4p = w4p.at[:, :NUM_CLASSES].set(w4).astype(jnp.bfloat16)
    b4p = jnp.zeros((1, LOGIT_PAD), jnp.float32).at[:, :NUM_CLASSES].set(b4)

    return (ln_g, ln_b, w1f, b1f, w2f, b2f, w3f, b3f, w4p, b4p)


def reference_forward(x, raw_params):
    """Pure-JAX f32 reference (full module semantics, unfolded BN)."""
    (ln_g, ln_b,
     w1, b1, g1, be1, m1, v1,
     w2, b2, g2, be2, m2, v2,
     w3, b3, g3, be3, m3, v3,
     w4, b4) = raw_params

    mu = jnp.mean(x, axis=-1, keepdims=True)
    var = jnp.mean((x - mu) ** 2, axis=-1, keepdims=True)
    h = (x - mu) / jnp.sqrt(var + LN_EPS) * ln_g + ln_b

    hp = jax.lax.Precision.HIGHEST
    for (w, b, g, be, m, v) in [(w1, b1, g1, be1, m1, v1),
                                (w2, b2, g2, be2, m2, v2),
                                (w3, b3, g3, be3, m3, v3)]:
        h = jnp.dot(h, w, precision=hp) + b
        h = (h - m) / jnp.sqrt(v + BN_EPS) * g + be
        h = jnp.maximum(h, 0.0)
    return jnp.dot(h, w4, precision=hp) + b4


if __name__ == "__main__":
    key = jax.random.PRNGKey(0)
    k_x, k_p = jax.random.split(key)

    B = 32   # module's configured batch size; small demo shape
    x = jax.random.normal(k_x, (B, GNN_DIM), jnp.float32)
    raw_params = init_params(k_p)
    kernel_params = fold_kernel_params(raw_params)

    # Small tile for the demo so the grid is exercised (2 even steps, which is
    # also what v7x's 2-core sharding wants).  Production default is tb=1024.
    logits = gnn_only_forward(x, kernel_params, tb=16)
    jax.block_until_ready(logits)

    ref = reference_forward(x, raw_params)
    assert logits.shape == (B, NUM_CLASSES)
    max_err = float(jnp.max(jnp.abs(logits - ref)))
    # bf16 inputs + bf16 MXU weights/activations (f32 accumulation) vs a pure
    # f32 reference -> expect ~1e-2-level logit differences; loose tolerance.
    assert jnp.allclose(logits, ref, atol=1e-1, rtol=1e-1), (
        f"mismatch vs reference, max|diff|={max_err}")

    print("KERNEL_OK")
</pallas_src>

<mosaic_0001>
module attributes {stable_mosaic.version = 11 : i64} {
  func.func @gnn_only_kernel(%arg0: i32, %arg1: memref<16x384xbf16, #tpu.memory_space<vmem>>, %arg2: memref<1x384xf32, #tpu.memory_space<vmem>>, %arg3: memref<1x384xf32, #tpu.memory_space<vmem>>, %arg4: memref<384x512xbf16, #tpu.memory_space<vmem>>, %arg5: memref<1x512xf32, #tpu.memory_space<vmem>>, %arg6: memref<512x256xbf16, #tpu.memory_space<vmem>>, %arg7: memref<1x256xf32, #tpu.memory_space<vmem>>, %arg8: memref<256x128xbf16, #tpu.memory_space<vmem>>, %arg9: memref<1x128xf32, #tpu.memory_space<vmem>>, %arg10: memref<128x128xbf16, #tpu.memory_space<vmem>>, %arg11: memref<1x128xf32, #tpu.memory_space<vmem>>, %arg12: memref<16x128xbf16, #tpu.memory_space<vmem>>) attributes {dimension_semantics = [#tpu.dimension_semantics<parallel>], iteration_bounds = array<i64: 2>, scalar_prefetch = 0 : i64, scratch_operands = 0 : i64, tpu.core_type = #tpu.core_type<tc>, window_params = [{transform_indices = @transform_0, window_bounds = array<i64: 16, 384>}, {pipeline_mode = #tpu.pipeline_mode<synchronous>, transform_indices = @transform_1, window_bounds = array<i64: 1, 384>}, {pipeline_mode = #tpu.pipeline_mode<synchronous>, transform_indices = @transform_2, window_bounds = array<i64: 1, 384>}, {pipeline_mode = #tpu.pipeline_mode<synchronous>, transform_indices = @transform_3, window_bounds = array<i64: 384, 512>}, {pipeline_mode = #tpu.pipeline_mode<synchronous>, transform_indices = @transform_4, window_bounds = array<i64: 1, 512>}, {pipeline_mode = #tpu.pipeline_mode<synchronous>, transform_indices = @transform_5, window_bounds = array<i64: 512, 256>}, {pipeline_mode = #tpu.pipeline_mode<synchronous>, transform_indices = @transform_6, window_bounds = array<i64: 1, 256>}, {pipeline_mode = #tpu.pipeline_mode<synchronous>, transform_indices = @transform_7, window_bounds = array<i64: 256, 128>}, {pipeline_mode = #tpu.pipeline_mode<synchronous>, transform_indices = @transform_8, window_bounds = array<i64: 1, 128>}, {pipeline_mode = #tpu.pipeline_mode<synchronous>, transform_indices = @transform_9, window_bounds = array<i64: 128, 128>}, {pipeline_mode = #tpu.pipeline_mode<synchronous>, transform_indices = @transform_10, window_bounds = array<i64: 1, 128>}, {transform_indices = @transform_11, window_bounds = array<i64: 16, 128>}]} {
    %c0 = arith.constant 0 : index
    %c0_0 = arith.constant 0 : index
    %0 = vector.load %arg1[%c0, %c0_0] : memref<16x384xbf16, #tpu.memory_space<vmem>>, vector<16x384xbf16>
    %1 = arith.extf %0 : vector<16x384xbf16> to vector<16x384xf32>
    %cst = arith.constant dense<0.000000e+00> : vector<16xf32>
    %2 = vector.multi_reduction <add>, %1, %cst [1] : vector<16x384xf32> to vector<16xf32>
    %3 = vector.shape_cast %2 : vector<16xf32> to vector<16x1xf32>
    %cst_1 = arith.constant 3.840000e+02 : f32
    %4 = vector.broadcast %cst_1 : f32 to vector<16x1xf32>
    %5 = arith.divf %3, %4 : vector<16x1xf32>
    %6 = vector.broadcast %5 : vector<16x1xf32> to vector<16x384xf32>
    %7 = arith.subf %1, %6 : vector<16x384xf32>
    %8 = arith.mulf %7, %7 : vector<16x384xf32>
    %cst_2 = arith.constant dense<0.000000e+00> : vector<16xf32>
    %9 = vector.multi_reduction <add>, %8, %cst_2 [1] : vector<16x384xf32> to vector<16xf32>
    %10 = vector.shape_cast %9 : vector<16xf32> to vector<16x1xf32>
    %cst_3 = arith.constant 3.840000e+02 : f32
    %11 = vector.broadcast %cst_3 : f32 to vector<16x1xf32>
    %12 = arith.divf %10, %11 : vector<16x1xf32>
    %cst_4 = arith.constant 9.99999974E-6 : f32
    %13 = vector.broadcast %cst_4 : f32 to vector<16x1xf32>
    %14 = arith.addf %12, %13 : vector<16x1xf32>
    %15 = math.rsqrt %14 : vector<16x1xf32>
    %16 = vector.broadcast %15 : vector<16x1xf32> to vector<16x384xf32>
    %17 = arith.mulf %7, %16 : vector<16x384xf32>
    %c0_5 = arith.constant 0 : index
    %c0_6 = arith.constant 0 : index
    %18 = vector.load %arg2[%c0_5, %c0_6] : memref<1x384xf32, #tpu.memory_space<vmem>>, vector<1x384xf32>
    %19 = vector.broadcast %18 : vector<1x384xf32> to vector<16x384xf32>
    %20 = arith.mulf %17, %19 : vector<16x384xf32>
    %c0_7 = arith.constant 0 : index
    %c0_8 = arith.constant 0 : index
    %21 = vector.load %arg3[%c0_7, %c0_8] : memref<1x384xf32, #tpu.memory_space<vmem>>, vector<1x384xf32>
    %22 = vector.broadcast %21 : vector<1x384xf32> to vector<16x384xf32>
    %23 = arith.addf %20, %22 : vector<16x384xf32>
    %24 = arith.truncf %23 : vector<16x384xf32> to vector<16x384xbf16>
    %c0_9 = arith.constant 0 : index
    %c0_10 = arith.constant 0 : index
    %25 = vector.load %arg4[%c0_9, %c0_10] : memref<384x512xbf16, #tpu.memory_space<vmem>>, vector<384x512xbf16>
    %cst_11 = arith.constant dense<0.000000e+00> : vector<16x512xf32>
    %26 = tpu.matmul %24, %25, %cst_11 {dimension_numbers = #tpu.dot_dimension_numbers<[1], [0], [0], [1], [0, 0, 1, 1], [], []>} : vector<16x384xbf16>, vector<384x512xbf16>, vector<16x512xf32> -> vector<16x512xf32>
    %27 = arith.truncf %26 : vector<16x512xf32> to vector<16x512xbf16>
    %c0_12 = arith.constant 0 : index
    %c0_13 = arith.constant 0 : index
    %28 = vector.load %arg5[%c0_12, %c0_13] : memref<1x512xf32, #tpu.memory_space<vmem>>, vector<1x512xf32>
    %29 = arith.truncf %28 : vector<1x512xf32> to vector<1x512xbf16>
    %30 = vector.broadcast %29 : vector<1x512xbf16> to vector<16x512xbf16>
    %31 = arith.addf %27, %30 : vector<16x512xbf16>
    %cst_14 = arith.constant 0.000000e+00 : bf16
    %32 = vector.broadcast %cst_14 : bf16 to vector<16x512xbf16>
    %33 = arith.maximumf %31, %32 : vector<16x512xbf16>
    %c0_15 = arith.constant 0 : index
    %c0_16 = arith.constant 0 : index
    %34 = vector.load %arg6[%c0_15, %c0_16] : memref<512x256xbf16, #tpu.memory_space<vmem>>, vector<512x256xbf16>
    %cst_17 = arith.constant dense<0.000000e+00> : vector<16x256xf32>
    %35 = tpu.matmul %33, %34, %cst_17 {dimension_numbers = #tpu.dot_dimension_numbers<[1], [0], [0], [1], [0, 0, 1, 1], [], []>} : vector<16x512xbf16>, vector<512x256xbf16>, vector<16x256xf32> -> vector<16x256xf32>
    %36 = arith.truncf %35 : vector<16x256xf32> to vector<16x256xbf16>
    %c0_18 = arith.constant 0 : index
    %c0_19 = arith.constant 0 : index
    %37 = vector.load %arg7[%c0_18, %c0_19] : memref<1x256xf32, #tpu.memory_space<vmem>>, vector<1x256xf32>
    %38 = arith.truncf %37 : vector<1x256xf32> to vector<1x256xbf16>
    %39 = vector.broadcast %38 : vector<1x256xbf16> to vector<16x256xbf16>
    %40 = arith.addf %36, %39 : vector<16x256xbf16>
    %cst_20 = arith.constant 0.000000e+00 : bf16
    %41 = vector.broadcast %cst_20 : bf16 to vector<16x256xbf16>
    %42 = arith.maximumf %40, %41 : vector<16x256xbf16>
    %c0_21 = arith.constant 0 : index
    %c0_22 = arith.constant 0 : index
    %43 = vector.load %arg8[%c0_21, %c0_22] : memref<256x128xbf16, #tpu.memory_space<vmem>>, vector<256x128xbf16>
    %cst_23 = arith.constant dense<0.000000e+00> : vector<16x128xf32>
    %44 = tpu.matmul %42, %43, %cst_23 {dimension_numbers = #tpu.dot_dimension_numbers<[1], [0], [0], [1], [0, 0, 1, 1], [], []>} : vector<16x256xbf16>, vector<256x128xbf16>, vector<16x128xf32> -> vector<16x128xf32>
    %45 = arith.truncf %44 : vector<16x128xf32> to vector<16x128xbf16>
    %c0_24 = arith.constant 0 : index
    %c0_25 = arith.constant 0 : index
    %46 = vector.load %arg9[%c0_24, %c0_25] : memref<1x128xf32, #tpu.memory_space<vmem>>, vector<1x128xf32>
    %47 = arith.truncf %46 : vector<1x128xf32> to vector<1x128xbf16>
    %48 = vector.broadcast %47 : vector<1x128xbf16> to vector<16x128xbf16>
    %49 = arith.addf %45, %48 : vector<16x128xbf16>
    %cst_26 = arith.constant 0.000000e+00 : bf16
    %50 = vector.broadcast %cst_26 : bf16 to vector<16x128xbf16>
    %51 = arith.maximumf %49, %50 : vector<16x128xbf16>
    %c0_27 = arith.constant 0 : index
    %c0_28 = arith.constant 0 : index
    %52 = vector.load %arg10[%c0_27, %c0_28] : memref<128x128xbf16, #tpu.memory_space<vmem>>, vector<128x128xbf16>
    %cst_29 = arith.constant dense<0.000000e+00> : vector<16x128xf32>
    %53 = tpu.matmul %51, %52, %cst_29 {dimension_numbers = #tpu.dot_dimension_numbers<[1], [0], [0], [1], [0, 0, 1, 1], [], []>} : vector<16x128xbf16>, vector<128x128xbf16>, vector<16x128xf32> -> vector<16x128xf32>
    %c0_30 = arith.constant 0 : index
    %c0_31 = arith.constant 0 : index
    %54 = vector.load %arg11[%c0_30, %c0_31] : memref<1x128xf32, #tpu.memory_space<vmem>>, vector<1x128xf32>
    %55 = vector.broadcast %54 : vector<1x128xf32> to vector<16x128xf32>
    %56 = arith.addf %53, %55 : vector<16x128xf32>
    %57 = arith.truncf %56 : vector<16x128xf32> to vector<16x128xbf16>
    %c0_32 = arith.constant 0 : index
    %c0_33 = arith.constant 0 : index
    %58 = vector.load %arg12[%c0_32, %c0_33] : memref<16x128xbf16, #tpu.memory_space<vmem>>, vector<16x128xbf16>
    tpu.vector_store %arg12[%c0_32, %c0_33], %57 {strides = array<i32>} : memref<16x128xbf16, #tpu.memory_space<vmem>>, vector<16x128xbf16>,
    return
  }
  func.func @transform_0(%arg0: i32) -> (i32, i32) {
    %c0_i32 = arith.constant 0 : i32
    %c0_i32_0 = arith.constant 0 : i32
    return %arg0, %c0_i32 : i32, i32
  }
  func.func @transform_1(%arg0: i32) -> (i32, i32) {
    %c0_i32 = arith.constant 0 : i32
    %c0_i32_0 = arith.constant 0 : i32
    %c0_i32_1 = arith.constant 0 : i32
    return %c0_i32, %c0_i32_0 : i32, i32
  }
  func.func @transform_2(%arg0: i32) -> (i32, i32) {
    %c0_i32 = arith.constant 0 : i32
    %c0_i32_0 = arith.constant 0 : i32
    %c0_i32_1 = arith.constant 0 : i32
    return %c0_i32, %c0_i32_0 : i32, i32
  }
  func.func @transform_3(%arg0: i32) -> (i32, i32) {
    %c0_i32 = arith.constant 0 : i32
    %c0_i32_0 = arith.constant 0 : i32
    %c0_i32_1 = arith.constant 0 : i32
    return %c0_i32, %c0_i32_0 : i32, i32
  }
  func.func @transform_4(%arg0: i32) -> (i32, i32) {
    %c0_i32 = arith.constant 0 : i32
    %c0_i32_0 = arith.constant 0 : i32
    %c0_i32_1 = arith.constant 0 : i32
    return %c0_i32, %c0_i32_0 : i32, i32
  }
  func.func @transform_5(%arg0: i32) -> (i32, i32) {
    %c0_i32 = arith.constant 0 : i32
    %c0_i32_0 = arith.constant 0 : i32
    %c0_i32_1 = arith.constant 0 : i32
    return %c0_i32, %c0_i32_0 : i32, i32
  }
  func.func @transform_6(%arg0: i32) -> (i32, i32) {
    %c0_i32 = arith.constant 0 : i32
    %c0_i32_0 = arith.constant 0 : i32
    %c0_i32_1 = arith.constant 0 : i32
    return %c0_i32, %c0_i32_0 : i32, i32
  }
  func.func @transform_7(%arg0: i32) -> (i32, i32) {
    %c0_i32 = arith.constant 0 : i32
    %c0_i32_0 = arith.constant 0 : i32
    %c0_i32_1 = arith.constant 0 : i32
    return %c0_i32, %c0_i32_0 : i32, i32
  }
  func.func @transform_8(%arg0: i32) -> (i32, i32) {
    %c0_i32 = arith.constant 0 : i32
    %c0_i32_0 = arith.constant 0 : i32
    %c0_i32_1 = arith.constant 0 : i32
    return %c0_i32, %c0_i32_0 : i32, i32
  }
  func.func @transform_9(%arg0: i32) -> (i32, i32) {
    %c0_i32 = arith.constant 0 : i32
    %c0_i32_0 = arith.constant 0 : i32
    %c0_i32_1 = arith.constant 0 : i32
    return %c0_i32, %c0_i32_0 : i32, i32
  }
  func.func @transform_10(%arg0: i32) -> (i32, i32) {
    %c0_i32 = arith.constant 0 : i32
    %c0_i32_0 = arith.constant 0 : i32
    %c0_i32_1 = arith.constant 0 : i32
    return %c0_i32, %c0_i32_0 : i32, i32
  }
  func.func @transform_11(%arg0: i32) -> (i32, i32) {
    %c0_i32 = arith.constant 0 : i32
    %c0_i32_0 = arith.constant 0 : i32
    return %arg0, %c0_i32 : i32, i32
  }
}

</mosaic_0001>

<bundles_post_ra>
// kernel: gnn_only_forward.1
= control target key start
LH: loop header
LB: loop body
LE: loop exit
PB: predicated region body
PF: predicated region fallthrough
CT: control target
= control target key end

     0   :  { %16 = vsyncpa [#allocation3], 0  ;;  %s3231_s0 = inlined_call_operand.vmem [shape: bf16[32,384], index: 0, kind: input, shape index: {}]   ;;  %s3232_s1 = inlined_call_operand.vmem [shape: f32[1,384], index: 1, kind: input, shape index: {}]   ;;  %s3233_s2 = inlined_call_operand.vmem [shape: f32[1,384], index: 2, kind: input, shape index: {}]   ;;  %s3234_s3 = inlined_call_operand.hbm [shape: bf16[384,512], index: 3, kind: input, shape index: {}]   ;;  %s3235_s4 = inlined_call_operand.vmem [shape: f32[1,512], index: 4, kind: input, shape index: {}]   ;;  %s3236_s5 = inlined_call_operand.hbm [shape: bf16[512,256], index: 5, kind: input, shape index: {}]   ;;  %s3237_s6 = inlined_call_operand.vmem [shape: f32[1,256], index: 6, kind: input, shape index: {}]   ;;  %s3238_s7 = inlined_call_operand.vmem [shape: bf16[256,128], index: 7, kind: input, shape index: {}]   ;;  %s3239_s8 = inlined_call_operand.vmem [shape: f32[1,128], index: 8, kind: input, shape index: {}]   ;;  %s3240_s9 = inlined_call_operand.hbm [shape: bf16[128,128], index: 9, kind: input, shape index: {}]   ;;  %s3241_s10 = inlined_call_operand.vmem [shape: f32[1,128], index: 10, kind: input, shape index: {}]   ;;  %s3242_s11 = inlined_call_operand.vmem [shape: bf16[32,128], index: 11, kind: output, shape index: {}]  }
   0x1   :  { %17 = vsyncpa [#allocation5], 0  ;;  %s2993_s17 = smov 0  }
   0x2 LB: > { %s2921_s18 = smov [#allocation4]   ;;  %s2248_s20 = sadd.s32 4294967295, %s2919_s17   ;;  %s2919_s17 = sphi %s2993_s17, %s23_s17  }
   0x3   : > { %s324_s19 = sshll.u32 %s2921_s18, 4  ;;  %p2250_p0 = scmp.ge.s32.totalorder %s2919_s17, 1  ;;  %s325_s19 = int_to_ptr.vmem [resolvable:$true] %s324_s19 }
   0x4   : > { %p290_p1 = scmp.lt.s32.totalorder %s2919_s17, 3  ;;  %p3003_p2 = scmp.eq.s32.totalorder %s2248_s20, 0 }
   0x5   : > { %s2922_s23 = smov [#allocation2]   ;;  %s2923_s26 = smov [#allocation6]  }
   0x6   : > { %p3007_p3 = pnand %p2250_p0, %p290_p1  ;;  %s308_s24 = sshll.u32 %s2922_s23, 4  ;;  %s3013_s24 = int_to_ptr.vmem [resolvable:$true] %s308_s24 }
   0x7   : > { %s3021_s27 = sshll.u32 %s2923_s26, 4  ;;  %s2838_s28 = scalar_lea.vmem %s325_s19, 8192  ;;  %s347_s27 = int_to_ptr.vmem [resolvable:$true] %s3021_s27 }
   0x8   : > { %p2523_p4 = pneg %p3007_p3  ;;  %p2839_p7 = scmp.ne.s32.totalorder %s325_s19, %s2838_s28 }
   0x9   : > { %p2846_p10 = scmp.lt.s32.totalorder %s325_s19, %s325_s19  ;;  %p2847_p11 = scmp.lt.s32.totalorder %s2838_s28, %s2838_s28 }
   0xa   : > { %p3017_p5 = pnand %p3003_p2, %p2523_p4 }
   0xb   : > { %p2848_p12 = por %p2847_p11, %p2846_p10 }
   0xc   : > { %p2829_p6 = pneg %p3017_p5 }
   0xe   : > { %p2841_p8 = pnand %p2839_p7, %p2829_p6 }
  0x10   : > { %p2842_p9 = pneg %p2841_p8 }
  0x12   : > { %p2849_p13 = pnand %p2848_p12, %p2842_p9 }
  0x14   : > { %2852 = shalt.err (!%p2849_p13)
}
  0x15   : > { %s2924_s29 = smov 128   ;;  %s2925_s30 = smov 8  }
  0x16   : > { %2529 = dma.hbm_to_vmem [thread:$0]  (!%p3017_p5), %s3236_s5, 8192, %s325_s19, [#allocation5], %s2924_s29, %s2924_s29, %s2925_s30  }
  0x17   : > { %s2864_s14 = scalar_lea.vmem %s3013_s24, 12288  ;;  %p2872_p7 = scmp.lt.s32.totalorder %s3013_s24, %s3013_s24 }
  0x18   : > { %p2865_p0 = scmp.ne.s32.totalorder %s3013_s24, %s2864_s14  ;;  %p2873_p8 = scmp.lt.s32.totalorder %s2864_s14, %s2864_s14 }
  0x1a   : > { %p2867_p1 = pnand %p2865_p0, %p2829_p6  ;;  %p2874_p9 = por %p2873_p8, %p2872_p7 }
  0x1c   : > { %p2868_p4 = pneg %p2867_p1 }
  0x1e   : > { %p2875_p10 = pnand %p2874_p9, %p2868_p4 }
  0x20   : > { %2878 = shalt.err (!%p2875_p10)
}
  0x21   : > { %s2926_s15 = smov 256   ;;  %s2927_s16 = smov 16  }
  0x22   : > { %2526 = dma.hbm_to_vmem [thread:$0]  (!%p3017_p5), %s3234_s3, 12288, %s3013_s24, [#allocation3], %s2926_s15, %s2926_s15, %s2927_s16  }
  0x23   : > { %s2890_s23 = scalar_lea.vmem %s347_s27, 1024  ;;  %p2898_p0 = scmp.lt.s32.totalorder %s347_s27, %s347_s27 }
  0x24   : > { %p2891_p11 = scmp.ne.s32.totalorder %s347_s27, %s2890_s23  ;;  %p2899_p1 = scmp.lt.s32.totalorder %s2890_s23, %s2890_s23 }
  0x26   : > { %p2893_p12 = pnand %p2891_p11, %p2829_p6  ;;  %p2900_p4 = por %p2899_p1, %p2898_p0 }
  0x28   : > { %p2894_p13 = pneg %p2893_p12 }
  0x2a   : > { %p2901_p7 = pnand %p2900_p4, %p2894_p13 }
  0x2c   : > { %2904 = shalt.err (!%p2901_p7)
}
  0x2d   : > { %s2928_s26 = smov 64   ;;  %s2929_s28 = smov 4  }
  0x2e   : > { %2532 = dma.hbm_to_vmem [thread:$0]  (!%p3017_p5), %s3240_s9, 1024, %s347_s27, [#allocation5], %s2928_s26, %s2928_s26, %s2929_s28  }
  0x2f   : > { %375 = sbr.rel (%p3007_p3) target bundleno = 1274 (0x4fa), region = 64 }
  0x34   : > { %2910 = dma.done.wait (%p3003_p2), [#allocation3], 12288  }
  0x35   : > { %2912 = vsyncadd (%p3003_p2), [#allocation3], 4294955008 }
  0x36   : > { %2914 = dma.done.wait (%p3003_p2), [#allocation5], 9216  }
  0x37   : > { %2916 = vsyncadd (%p3003_p2), [#allocation5], 4294958080  ;;  %s2259_s24 = sshll.u32 %s2248_s20, 1  ;;  %v2559_v13 = vld [vmem:[#allocation2 + $0xe4] ss:$16 sps:$4 sm:$0xff]   ;;  %vm2932_vm0 = vmmov 0  }
  0x38   : > { %p425_p6 = scmp.lt.s32.totalorder %s2259_s24, 3  ;;  %v2561_v14 = vld [vmem:[#allocation2 + $0xe0] ss:$16 sps:$4 sm:$0xff]   ;;  %v2562_v15 = vld [vmem:[#allocation2 + $0xc4] ss:$16 sps:$4 sm:$0xff]   ;;  %1116 = vmatprep.subr.bf16.mxu0 %v2559_v13 }
  0x39   : > { %1117 = vmatpush1.bf16.msra.mxu0 %v2561_v14  ;;  %v2564_v16 = vld [vmem:[#allocation2 + $0xc0] ss:$16 sps:$4 sm:$0xff]   ;;  %v2565_v17 = vld [vmem:[#allocation2 + $0xa4] ss:$16 sps:$4 sm:$0xff]  }
  0x3a   : > { %s3247_s24 = smov (!%p425_p6, %s2259_s24), 3  ;;  %1118 = vmatprep.subr.bf16.mxu0 %v2562_v15  ;;  %v2567_v18 = vld [vmem:[#allocation2 + $0xa0] ss:$16 sps:$4 sm:$0xff]   ;;  %v2583_v19 = vld [vmem:[#allocation2 + $0x2e4] ss:$16 sps:$4 sm:$0xff]  }
  0x3b   : > { %s2510_s22 = smul.u32 12, %s3247_s24  ;;  %v2568_v20 = vld [vmem:[#allocation2 + $0x84] ss:$16 sps:$4 sm:$0xff]   ;;  %v2587_v21 = vld [vmem:[#allocation2 + $0x2e0] ss:$16 sps:$4 sm:$0xff]   ;;  %1159 = vmatprep.subr.bf16.mxu1 %v2583_v19  ;;  %s2262_s28 = sshll.u32 %s3247_s24, 2 }
  0x3c   : > { %1160 = vmatpush1.bf16.msra.mxu1 %v2587_v21  ;;  %v2570_v22 = vld [vmem:[#allocation2 + $0x80] ss:$16 sps:$4 sm:$0xff]   ;;  %v2571_v23 = vld [vmem:[#allocation2 + $0x64] ss:$16 sps:$4 sm:$0xff]   ;;  %v2636_v19 = vld [vmem:[#allocation2 + $0x2ec] ss:$16 sps:$4 sm:$0xff]  }
  0x3d   : > { %s429_s12 = scalar_lea.vmem %s3231_s0, %s2510_s22  ;;  %1119 = vmatpush1.bf16.msra.mxu0 %v2564_v16  ;;  %v2573_v24 = vld [vmem:[#allocation2 + $0x60] ss:$16 sps:$4 sm:$0xff]   ;;  %v2574_v25 = vld [vmem:[#allocation2 + $0x44] ss:$16 sps:$4 sm:$0xff]   ;;  %s435_s22 = scalar_lea.vmem %s3242_s11, %s2262_s28 }
  0x3e   : > { %v438_v0 = vld [vmem:[%s429_s12] sm:$0xff]  ;;  %v3073_v1 = vld [vmem:[%s429_s12 + $0x8] ss:$12 sps:$4 sm:$0xff]   ;;  %v3075_v2 = vld [vmem:[%s429_s12 + $0xc] sm:$0xff]  ;;  %1120 = vmatprep.subr.bf16.mxu0 %v2565_v17 }
  0x3f   : > { %v442_v3 = vunpack.c.l.bf16 %v438_v0  ;;  %v443_v4 = vunpack.c.h.bf16 %v438_v0  ;;  %v444_v5 = vunpack.c.l.bf16 %v3073_v1  ;;  %v445_v6 = vunpack.c.l.bf16 %v3075_v2  ;;  %v2576_v26 = vld [vmem:[#allocation2 + $0x40] ss:$16 sps:$4 sm:$0xff]   ;;  %v2577_v27 = vld [vmem:[#allocation2 + $0x24] ss:$16 sps:$4 sm:$0xff]  }
  0x40   : > { %v446_v7 = vunpack.c.h.bf16 %v3075_v2  ;;  %v447_v9 = vunpack.c.h.bf16 %v3073_v1  ;;  %v2579_v28 = vld [vmem:[#allocation2 + $0x20] ss:$16 sps:$4 sm:$0xff]   ;;  %v2580_v29 = vld [vmem:[#allocation2 + $0x4] ss:$16 sps:$4 sm:$0xff]  }
  0x41   : > { %v448_v8 = vadd.f32 %v443_v4, %v442_v3  ;;  %1121 = vmatpush1.bf16.msra.mxu0 %v2567_v18  ;;  %v2582_v30 = vld [vmem:[#allocation2] ss:$16 sps:$4 sm:$0xff]   ;;  %v2585_v31 = vld [vmem:[#allocation2 + $0x1e4] ss:$16 sps:$4 sm:$0xff]   ;;  %v2633_v18 = vld [vmem:[#allocation2 + $0xec] ss:$16 sps:$4 sm:$0xff]  }
  0x42   : > { %v452_v10 = vadd.f32 %v446_v7, %v445_v6  ;;  %1122 = vmatprep.subr.bf16.mxu0 %v2568_v20  ;;  %v2588_v32 = vld [vmem:[#allocation2 + $0x1e0] ss:$16 sps:$4 sm:$0xff]   ;;  %v2589_v53 = vld [vmem:[#allocation2 + $0x2c4] ss:$16 sps:$4 sm:$0xff]  }
  0x43   : > { %v449_v11 = vadd.f32 %v448_v8, %v444_v5  ;;  %v2591_v54 = vld [vmem:[#allocation2 + $0x1c4] ss:$16 sps:$4 sm:$0xff]   ;;  %v2593_v55 = vld [vmem:[#allocation2 + $0x2c0] ss:$16 sps:$4 sm:$0xff]   ;;  %1161 = vmatprep.subr.bf16.mxu1 %v2589_v53 }
  0x44   : > { %v453_v12 = vadd.f32 %v452_v10, %v447_v9  ;;  %v2594_v56 = vld [vmem:[#allocation2 + $0x1c0] ss:$16 sps:$4 sm:$0xff]   ;;  %1162 = vmatpush1.bf16.msra.mxu1 %v2593_v55  ;;  %v2595_v57 = vld [vmem:[#allocation2 + $0x2a4] ss:$16 sps:$4 sm:$0xff]  }
  0x45   : > { %450 = vadd.xlane.f32.xlu0 %v449_v11  ;;  %1123 = vmatpush1.bf16.msra.mxu0 %v2570_v22  ;;  %v2597_v58 = vld [vmem:[#allocation2 + $0x1a4] ss:$16 sps:$4 sm:$0xff]   ;;  %v2599_v59 = vld [vmem:[#allocation2 + $0x2a0] ss:$16 sps:$4 sm:$0xff]   ;;  %v2930_v11 = vmov 0  }
  0x46   : > { %1124 = vmatprep.subr.bf16.mxu0 %v2571_v23  ;;  %1163 = vmatprep.subr.bf16.mxu1 %v2595_v57  ;;  %v2600_v60 = vld [vmem:[#allocation2 + $0x1a0] ss:$16 sps:$4 sm:$0xff]   ;;  %v2601_v61 = vld [vmem:[#allocation2 + $0x284] ss:$16 sps:$4 sm:$0xff]  }
  0x47   : > { %v2603_v62 = vld [vmem:[#allocation2 + $0x184] ss:$16 sps:$4 sm:$0xff]   ;;  %v2605_v63 = vld [vmem:[#allocation2 + $0x280] ss:$16 sps:$4 sm:$0xff]   ;;  %1191 = vmatprep.mubr.bf16.mxu1 %v2930_v11 }
  0x48   : > { %1164 = vmatpush1.bf16.msra.mxu1 %v2599_v59  ;;  %v2606_v0 = vld [vmem:[#allocation2 + $0x180] ss:$16 sps:$4 sm:$0xff]   ;;  %v2607_v1 = vld [vmem:[#allocation2 + $0x264] ss:$16 sps:$4 sm:$0xff]  }
  0x49   : > { %454 = vadd.xlane.f32.xlu0 %v453_v12  ;;  %1125 = vmatpush1.bf16.msra.mxu0 %v2573_v24  ;;  %v2609_v2 = vld [vmem:[#allocation2 + $0x164] ss:$16 sps:$4 sm:$0xff]   ;;  %v2618_v8 = vld [vmem:[#allocation2 + $0x140] ss:$16 sps:$4 sm:$0xff]  }
  0x4a   : > { %1126 = vmatprep.subr.bf16.mxu0 %v2574_v25  ;;  %1165 = vmatprep.subr.bf16.mxu1 %v2601_v61  ;;  %v2621_v10 = vld [vmem:[#allocation2 + $0x124] ss:$16 sps:$4 sm:$0xff]   ;;  %v2623_v12 = vld [vmem:[#allocation2 + $0x220] ss:$16 sps:$4 sm:$0xff]  }
  0x4b   : > { %v2624_v13 = vld [vmem:[#allocation2 + $0x120] ss:$16 sps:$4 sm:$0xff]   ;;  %v2625_v14 = vld [vmem:[#allocation2 + $0x204] ss:$16 sps:$4 sm:$0xff]  }
  0x4c   : > { %1166 = vmatpush1.bf16.msra.mxu1 %v2605_v63  ;;  %v2627_v15 = vld [vmem:[#allocation2 + $0x104] ss:$16 sps:$4 sm:$0xff]   ;;  %v2629_v16 = vld [vmem:[#allocation2 + $0x200] ss:$16 sps:$4 sm:$0xff]  }
  0x4d   : > { %1127 = vmatpush1.bf16.msra.mxu0 %v2576_v26  ;;  %1167 = vmatprep.subr.bf16.mxu1 %v2607_v1  ;;  %v2630_v17 = vld [vmem:[#allocation2 + $0x100] ss:$16 sps:$4 sm:$0xff]   ;;  %v493_v26 = vlaneseq  ;;  %v2642_v1 = vld [vmem:[#allocation2 + $0x2cc] ss:$16 sps:$4 sm:$0xff]  }
  0x4e   : > { %1128 = vmatprep.subr.bf16.mxu0 %v2577_v27 }
  0x4f   : > { %v3106_v27 = vshrl.u32 %v493_v26, 7  ;;  %v2678_v26 = vld [vmem:[#allocation2 + $0x20c] ss:$16 sps:$4 sm:$0xff]  }
  0x51   : > { %1129 = vmatpush1.bf16.msra.mxu0 %v2579_v28  ;;  %v3109_v28 = vsub.s32 1, %v3106_v27 }
  0x52   : > { %1130 = vmatprep.subr.bf16.mxu0 %v2580_v29  ;;  %v3112_v29 = vsub.s32 2, %v3106_v27 }
  0x55   : > { %1131 = vmatpush1.bf16.msra.mxu0 %v2582_v30  ;;  %v491_v30 = vld [vmem:[%s3232_s1] sm:$0x7] }
  0x56   : > { %1132 = vmatprep.subr.bf16.mxu0 %v2585_v31  ;;  %v3118_v31 = vsub.s32 0, %v3106_v27 }
  0x59   : > { %1133 = vmatpush2.bf16.msra.mxu0 %v2588_v32 }
  0x5a   : > { %1134 = vmatprep.subr.bf16.mxu0 %v2591_v54 }
  0x5d   : > { %1135 = vmatpush2.bf16.msra.mxu0 %v2594_v56 }
  0x5e   : > { %1136 = vmatprep.subr.bf16.mxu0 %v2597_v58 }
  0x61   : > { %1137 = vmatpush2.bf16.msra.mxu0 %v2600_v60  ;;  %v2631_v60 = vld [vmem:[#allocation2 + $0xe8] ss:$16 sps:$4 sm:$0xff]  }
  0x62   : > { %1138 = vmatprep.subr.bf16.mxu0 %v2603_v62 }
  0x65   : > { %1139 = vmatpush2.bf16.msra.mxu0 %v2606_v0 }
  0x66   : > { %1140 = vmatprep.subr.bf16.mxu0 %v2609_v2  ;;  %v2637_v2 = vld [vmem:[#allocation2 + $0xc8] ss:$16 sps:$4 sm:$0xff]  }
  0xce   : > { %v451_v33 = vpop.xlane.xlu0 %450 }
  0xcf   : > { %v457_v34 = vmul.f32 0.0026041667, %v451_v33 }
  0xd1   : > { %v3081_v35 = vsub.f32 %v442_v3, %v457_v34  ;;  %v3083_v36 = vsub.f32 %v443_v4, %v457_v34  ;;  %v3085_v37 = vsub.f32 %v444_v5, %v457_v34  ;;  %v2611_v3 = vld [vmem:[#allocation2 + $0x260] ss:$16 sps:$4 sm:$0xff]   ;;  %v2613_v5 = vld [vmem:[#allocation2 + $0x244] ss:$16 sps:$4 sm:$0xff]   ;;  %v500_v34 = vrot.slane %v491_v30, %v3109_v28 }
  0xd2   : > { %v455_v38 = vpop.xlane.xlu0 %454  ;;  %v2612_v4 = vld [vmem:[#allocation2 + $0x160] ss:$16 sps:$4 sm:$0xff]   ;;  %1168 = vmatpush1.bf16.msra.mxu1 %v2611_v3  ;;  %v2640_v3 = vld [vmem:[#allocation2 + $0x2c8] ss:$16 sps:$4 sm:$0xff]  }
  0xd3   : > { %v458_v39 = vmul.f32 0.0026041667, %v455_v38  ;;  %v465_v40 = vmul.f32 %v3081_v35, %v3081_v35  ;;  %v466_v41 = vmul.f32 %v3083_v36, %v3083_v36  ;;  %v467_v42 = vmul.f32 %v3085_v37, %v3085_v37  ;;  %1141 = vmatpush2.bf16.msra.mxu0 %v2612_v4  ;;  %1169 = vmatprep.subr.bf16.mxu1 %v2613_v5  ;;  %v514_v38 = vld [vmem:[%s3233_s2] sm:$0x7]  ;;  %v2645_v4 = vld [vmem:[#allocation2 + $0xac] ss:$16 sps:$4 sm:$0xff]  }
  0xd4   : > { %v519_v53 = vrot.slane %v514_v38, %v3118_v31  ;;  %v2648_v5 = vld [vmem:[#allocation2 + $0x2ac] ss:$16 sps:$4 sm:$0xff]  }
  0xd5   : > { %v3093_v43 = vsub.f32 %v445_v6, %v458_v39  ;;  %v3095_v44 = vsub.f32 %v446_v7, %v458_v39  ;;  %v3097_v45 = vsub.f32 %v447_v9, %v458_v39  ;;  %v471_v46 = vadd.f32 %v466_v41, %v465_v40  ;;  %v2615_v6 = vld [vmem:[#allocation2 + $0x144] ss:$16 sps:$4 sm:$0xff]   ;;  %v2617_v7 = vld [vmem:[#allocation2 + $0x240] ss:$16 sps:$4 sm:$0xff]  }
  0xd6   : > { %v2619_v9 = vld [vmem:[#allocation2 + $0x224] ss:$16 sps:$4 sm:$0xff]   ;;  %1142 = vmatprep.subr.bf16.mxu0 %v2615_v6  ;;  %1170 = vmatpush1.bf16.msra.mxu1 %v2617_v7  ;;  %v504_v40 = vrot.slane %v491_v30, %v3112_v29  ;;  %v2643_v6 = vld [vmem:[#allocation2 + $0xa8] ss:$16 sps:$4 sm:$0xff]  }
  0xd7   : > { %v472_v47 = vadd.f32 %v471_v46, %v467_v42  ;;  %v468_v48 = vmul.f32 %v3093_v43, %v3093_v43  ;;  %v469_v49 = vmul.f32 %v3095_v44, %v3095_v44  ;;  %v470_v50 = vmul.f32 %v3097_v45, %v3097_v45  ;;  %1143 = vmatpush2.bf16.msra.mxu0 %v2618_v8  ;;  %v2646_v7 = vld [vmem:[#allocation2 + $0x2a8] ss:$16 sps:$4 sm:$0xff]   ;;  %v2651_v8 = vld [vmem:[#allocation2 + $0x8c] ss:$16 sps:$4 sm:$0xff]  }
  0xd8   : > { %1171 = vmatprep.subr.bf16.mxu1 %v2619_v9  ;;  %1144 = vmatprep.subr.bf16.mxu0 %v2621_v10  ;;  %v496_v42 = vrot.slane %v491_v30, %v3118_v31  ;;  %v2654_v9 = vld [vmem:[#allocation2 + $0x28c] ss:$16 sps:$4 sm:$0xff]   ;;  %v2649_v10 = vld [vmem:[#allocation2 + $0x88] ss:$16 sps:$4 sm:$0xff]  }
  0xd9   : > { %473 = vadd.xlane.f32.xlu1 %v472_v47  ;;  %v475_v51 = vadd.f32 %v469_v49, %v468_v48  ;;  %v523_v47 = vrot.slane %v514_v38, %v3109_v28  ;;  %v527_v48 = vrot.slane %v514_v38, %v3112_v29  ;;  %v2673_v30 = vld [vmem:[#allocation2 + $0x8] ss:$16 sps:$4 sm:$0xff]  }
  0xda   : > { %1172 = vmatpush1.bf16.msra.mxu1 %v2623_v12  ;;  %v2652_v12 = vld [vmem:[#allocation2 + $0x288] ss:$16 sps:$4 sm:$0xff]  }
  0xdb   : > { %v476_v52 = vadd.f32 %v475_v51, %v470_v50  ;;  %1145 = vmatpush2.bf16.msra.mxu0 %v2624_v13  ;;  %1173 = vmatprep.subr.bf16.mxu1 %v2625_v14  ;;  %v2657_v13 = vld [vmem:[#allocation2 + $0x6c] ss:$16 sps:$4 sm:$0xff]   ;;  %v2679_v38 = vld [vmem:[#allocation2 + $0x1e8] ss:$16 sps:$4 sm:$0xff]  }
  0xdc   : > { %1146 = vmatprep.subr.bf16.mxu0 %v2627_v15  ;;  %v2660_v14 = vld [vmem:[#allocation2 + $0x26c] ss:$16 sps:$4 sm:$0xff]   ;;  %v2655_v15 = vld [vmem:[#allocation2 + $0x68] ss:$16 sps:$4 sm:$0xff]  }
  0xdd   : > { %477 = vadd.xlane.f32.xlu1 %v476_v52 }
  0xde   : > { %1174 = vmatpush1.bf16.msra.mxu1 %v2629_v16  ;;  %v2658_v16 = vld [vmem:[#allocation2 + $0x268] ss:$16 sps:$4 sm:$0xff]  }
  0xdf   : > { %1147 = vmatpush2.bf16.msra.mxu0 %v2630_v17  ;;  %1202 = vmatprep.subr.bf16.mxu1 %v2633_v18  ;;  %v2663_v17 = vld [vmem:[#allocation2 + $0x4c] ss:$16 sps:$4 sm:$0xff]  }
  0xe0   : > { %1245 = vmatprep.subr.bf16.mxu0 %v2636_v19  ;;  %v2666_v18 = vld [vmem:[#allocation2 + $0x24c] ss:$16 sps:$4 sm:$0xff]   ;;  %v2661_v19 = vld [vmem:[#allocation2 + $0x48] ss:$16 sps:$4 sm:$0xff]  }
 0x162   : > { %v474_v20 = vpop.xlane.xlu1 %473 }
 0x163   : > { %v479_v21 = vmul.f32 0.0026041667, %v474_v20  ;;  %v2664_v20 = vld [vmem:[#allocation2 + $0x248] ss:$16 sps:$4 sm:$0xff]  }
 0x165   : > { %v481_v22 = vadd.f32 1e-05, %v479_v21  ;;  %v2669_v21 = vld [vmem:[#allocation2 + $0x2c] ss:$16 sps:$4 sm:$0xff]  }
 0x166   : > { %v478_v23 = vpop.xlane.xlu1 %477 }
 0x167   : > { %2823 = vrsqrt.f32 %v481_v22  ;;  %v480_v24 = vmul.f32 0.0026041667, %v478_v23  ;;  %v2672_v22 = vld [vmem:[#allocation2 + $0x22c] ss:$16 sps:$4 sm:$0xff]   ;;  %v2667_v23 = vld [vmem:[#allocation2 + $0x28] ss:$16 sps:$4 sm:$0xff]  }
 0x169   : > { %v482_v25 = vadd.f32 1e-05, %v480_v24  ;;  %v2670_v24 = vld [vmem:[#allocation2 + $0x228] ss:$16 sps:$4 sm:$0xff]  }
 0x16b   : > { %2825 = vrsqrt.f32 %v482_v25  ;;  %v2675_v25 = vld [vmem:[#allocation2 + $0xc] ss:$16 sps:$4 sm:$0xff]  }
 0x174   : > { %v2824_v32 = vpop.eup %2823 }
 0x175   : > { %v486_v33 = vmul.f32 %v2824_v32, %v3083_v36  ;;  %v487_v39 = vmul.f32 %v2824_v32, %v3085_v37  ;;  %v485_v41 = vmul.f32 %v2824_v32, %v3081_v35  ;;  %v2676_v32 = vld [vmem:[#allocation2 + $0x208] ss:$16 sps:$4 sm:$0xff]  }
 0x177   : > { %v509_v49 = vmul.f32 %v500_v34, %v486_v33  ;;  %v510_v51 = vmul.f32 %v504_v40, %v487_v39  ;;  %v508_v37 = vmul.f32 %v496_v42, %v485_v41  ;;  %v2681_v33 = vld [vmem:[#allocation2 + $0x1ec] ss:$16 sps:$4 sm:$0xff]  }
 0x178   : > { %v2826_v46 = vpop.eup %2825  ;;  %v2684_v39 = vld [vmem:[#allocation2 + $0x1cc] ss:$16 sps:$4 sm:$0xff]  }
 0x179   : > { %v489_v36 = vmul.f32 %v2826_v46, %v3095_v44  ;;  %v490_v50 = vmul.f32 %v2826_v46, %v3097_v45  ;;  %v488_v52 = vmul.f32 %v2826_v46, %v3093_v43  ;;  %v532_v56 = vadd.f32 %v523_v47, %v509_v49  ;;  %v2634_v45 = vld [vmem:[#allocation2 + $0x2e8] ss:$16 sps:$4 sm:$0xff]   ;;  %v2639_v43 = vld [vmem:[#allocation2 + $0xcc] ss:$16 sps:$4 sm:$0xff]  }
 0x17a   : > { %v533_v58 = vadd.f32 %v527_v48, %v510_v51  ;;  %v531_v61 = vadd.f32 %v519_v53, %v508_v37  ;;  %v2708_v41 = vld [vmem:[#allocation4 + $0x64] ss:$8 sps:$4 sm:$0xff]  }
 0x17b   : > { %v512_v54 = vmul.f32 %v500_v34, %v489_v36  ;;  %v513_v35 = vmul.f32 %v504_v40, %v490_v50  ;;  %v511_v55 = vmul.f32 %v496_v42, %v488_v52  ;;  %v2705_v34 = vld [vmem:[#allocation4 + $0x74] ss:$8 sps:$4 sm:$0xff]   ;;  %v2703_v40 = vld [vmem:[#allocation4 + $0x70] ss:$8 sps:$4 sm:$0xff]   ;;  %v2714_v51 = vld [vmem:[#allocation4 + $0x44] ss:$8 sps:$4 sm:$0xff]  }
 0x17c   : > { %v2682_v42 = vld [vmem:[#allocation2 + $0x1c8] ss:$16 sps:$4 sm:$0xff]   ;;  %v2687_v46 = vld [vmem:[#allocation2 + $0x1ac] ss:$16 sps:$4 sm:$0xff]  }
 0x17d   : > { %v535_v57 = vadd.f32 %v523_v47, %v512_v54  ;;  %v536_v59 = vadd.f32 %v527_v48, %v513_v35  ;;  %v534_v62 = vadd.f32 %v519_v53, %v511_v55  ;;  %v2706_v47 = vld [vmem:[#allocation4 + $0x60] ss:$8 sps:$4 sm:$0xff]   ;;  %v2711_v48 = vld [vmem:[#allocation4 + $0x54] ss:$8 sps:$4 sm:$0xff]   ;;  %v2709_v50 = vld [vmem:[#allocation4 + $0x50] ss:$8 sps:$4 sm:$0xff]  }
 0x17e   : > { %v2685_v36 = vld [vmem:[#allocation2 + $0x1a8] ss:$16 sps:$4 sm:$0xff]   ;;  %v2690_v49 = vld [vmem:[#allocation2 + $0x18c] ss:$16 sps:$4 sm:$0xff]  }
 0x17f   : > { %v538_v44 = vpack.c.bf16 %v535_v57, %v532_v56  ;;  %v3135_v63 = vpack.c.bf16 %v536_v59, %v533_v58  ;;  %v3137_v0 = vpack.c.bf16 %v534_v62, %v531_v61  ;;  %v2688_v52 = vld [vmem:[#allocation2 + $0x188] ss:$16 sps:$4 sm:$0xff]   ;;  %v2693_v37 = vld [vmem:[#allocation2 + $0x16c] ss:$16 sps:$4 sm:$0xff]  }
 0x180   : > { %v2712_v53 = vld [vmem:[#allocation4 + $0x40] ss:$8 sps:$4 sm:$0xff]   ;;  %v2717_v54 = vld [vmem:[#allocation4 + $0x34] ss:$8 sps:$4 sm:$0xff]   ;;  %v2715_v56 = vld [vmem:[#allocation4 + $0x30] ss:$8 sps:$4 sm:$0xff]  }
 0x181   : > { %1148 = vmatprep.mubr.bf16.mxu0 %v538_v44  ;;  %1192 = vmatmul.mubr.bf16.vlgmr.msra.gmra.mxu1 %v3135_v63  ;;  %v2691_v35 = vld [vmem:[#allocation2 + $0x168] ss:$16 sps:$4 sm:$0xff]   ;;  %v2696_v55 = vld [vmem:[#allocation2 + $0x14c] ss:$16 sps:$4 sm:$0xff]  }
 0x182   : > { %1203 = vmatpush1.bf16.msra.mxu1 %v2631_v60  ;;  %1149 = vmatmul.mubr.bf16.vlgmr.msra.gmra.mxu0 %v3137_v0  ;;  %v2720_v57 = vld [vmem:[#allocation4 + $0x24] ss:$8 sps:$4 sm:$0xff]   ;;  %v2694_v58 = vld [vmem:[#allocation2 + $0x148] ss:$16 sps:$4 sm:$0xff]   ;;  %v2723_v61 = vld [vmem:[#allocation4 + $0x14] ss:$8 sps:$4 sm:$0xff]  }
 0x183   : > { %1234 = vmatprep.mubr.bf16.mxu1 %v538_v44  ;;  %1246 = vmatpush1.bf16.msra.mxu0 %v2634_v45  ;;  %v2699_v59 = vld [vmem:[#allocation2 + $0x12c] ss:$16 sps:$4 sm:$0xff]   ;;  %v2718_v60 = vld [vmem:[#allocation4 + $0x20] ss:$8 sps:$4 sm:$0xff]  }
 0x184   : > { %1204 = vmatprep.subr.bf16.mxu1 %v2639_v43  ;;  %1247 = vmatprep.subr.bf16.mxu0 %v2642_v1  ;;  %v2697_v62 = vld [vmem:[#allocation2 + $0x128] ss:$16 sps:$4 sm:$0xff]   ;;  %v2702_v44 = vld [vmem:[#allocation2 + $0x10c] ss:$16 sps:$4 sm:$0xff]  }
 0x185   : > { %1277 = vmatprep.mubr.bf16.mxu0 %v2930_v11  ;;  %v2726_v45 = vld [vmem:[#allocation4 + $0x4] ss:$8 sps:$4 sm:$0xff]   ;;  %v2700_v43 = vld [vmem:[#allocation2 + $0x108] ss:$16 sps:$4 sm:$0xff]  }
 0x186   : > { %1205 = vmatpush1.bf16.msra.mxu1 %v2637_v2  ;;  %v2724_v1 = vld [vmem:[#allocation4] ss:$8 sps:$4 sm:$0xff]   ;;  %v2729_v2 = vld [vmem:[#allocation4 + $0xf4] ss:$8 sps:$4 sm:$0xff]  }
 0x187   : > { %1248 = vmatpush1.bf16.msra.mxu0 %v2640_v3  ;;  %1206 = vmatprep.subr.bf16.mxu1 %v2645_v4  ;;  %v2727_v3 = vld [vmem:[#allocation4 + $0xf0] ss:$8 sps:$4 sm:$0xff]   ;;  %v2732_v4 = vld [vmem:[#allocation4 + $0xe4] ss:$8 sps:$4 sm:$0xff]  }
 0x188   : > { %1249 = vmatprep.subr.bf16.mxu0 %v2648_v5  ;;  %v2730_v5 = vld [vmem:[#allocation4 + $0xe0] ss:$8 sps:$4 sm:$0xff]  }
 0x18a   : > { %1207 = vmatpush1.bf16.msra.mxu1 %v2643_v6  ;;  %v2735_v6 = vld [vmem:[#allocation4 + $0xd4] ss:$8 sps:$4 sm:$0xff]  }
 0x18b   : > { %1250 = vmatpush1.bf16.msra.mxu0 %v2646_v7  ;;  %1208 = vmatprep.subr.bf16.mxu1 %v2651_v8  ;;  %v2733_v7 = vld [vmem:[#allocation4 + $0xd0] ss:$8 sps:$4 sm:$0xff]   ;;  %v2738_v8 = vld [vmem:[#allocation4 + $0xc4] ss:$8 sps:$4 sm:$0xff]  }
 0x18c   : > { %1251 = vmatprep.subr.bf16.mxu0 %v2654_v9  ;;  %v2736_v9 = vld [vmem:[#allocation4 + $0xc0] ss:$8 sps:$4 sm:$0xff]  }
 0x18e   : > { %1209 = vmatpush1.bf16.msra.mxu1 %v2649_v10  ;;  %v2741_v10 = vld [vmem:[#allocation4 + $0xb4] ss:$8 sps:$4 sm:$0xff]  }
 0x18f   : > { %1252 = vmatpush1.bf16.msra.mxu0 %v2652_v12  ;;  %1210 = vmatprep.subr.bf16.mxu1 %v2657_v13  ;;  %v2751_v12 = vld [vmem:[#allocation4 + $0x170] ss:$8 sps:$4 sm:$0xff]   ;;  %v2753_v13 = vld [vmem:[#allocation4 + $0x174] ss:$8 sps:$4 sm:$0xff]  }
 0x190   : > { %1253 = vmatprep.subr.bf16.mxu0 %v2660_v14  ;;  %v2739_v14 = vld [vmem:[#allocation4 + $0xb0] ss:$8 sps:$4 sm:$0xff]  }
 0x192   : > { %1211 = vmatpush1.bf16.msra.mxu1 %v2655_v15  ;;  %v2744_v15 = vld [vmem:[#allocation4 + $0xa4] ss:$8 sps:$4 sm:$0xff]  }
 0x193   : > { %1254 = vmatpush1.bf16.msra.mxu0 %v2658_v16  ;;  %1212 = vmatprep.subr.bf16.mxu1 %v2663_v17  ;;  %v2756_v16 = vld [vmem:[#allocation4 + $0x164] ss:$8 sps:$4 sm:$0xff]   ;;  %v2742_v17 = vld [vmem:[#allocation4 + $0xa0] ss:$8 sps:$4 sm:$0xff]  }
 0x194   : > { %1255 = vmatprep.subr.bf16.mxu0 %v2666_v18  ;;  %v2759_v18 = vld [vmem:[#allocation4 + $0x154] ss:$8 sps:$4 sm:$0xff]  }
 0x196   : > { %1213 = vmatpush1.bf16.msra.mxu1 %v2661_v19  ;;  %v2747_v19 = vld [vmem:[#allocation4 + $0x94] ss:$8 sps:$4 sm:$0xff]  }
 0x197   : > { %1256 = vmatpush1.bf16.msra.mxu0 %v2664_v20  ;;  %1214 = vmatprep.subr.bf16.mxu1 %v2669_v21  ;;  %v2757_v20 = vld [vmem:[#allocation4 + $0x150] ss:$8 sps:$4 sm:$0xff]   ;;  %v2762_v21 = vld [vmem:[#allocation4 + $0x144] ss:$8 sps:$4 sm:$0xff]  }
 0x198   : > { %1257 = vmatprep.subr.bf16.mxu0 %v2672_v22  ;;  %v2745_v22 = vld [vmem:[#allocation4 + $0x90] ss:$8 sps:$4 sm:$0xff]  }
 0x19a   : > { %1215 = vmatpush1.bf16.msra.mxu1 %v2667_v23  ;;  %v2750_v23 = vld [vmem:[#allocation4 + $0x84] ss:$8 sps:$4 sm:$0xff]  }
 0x19b   : > { %1258 = vmatpush1.bf16.msra.mxu0 %v2670_v24  ;;  %1216 = vmatprep.subr.bf16.mxu1 %v2675_v25  ;;  %v2760_v24 = vld [vmem:[#allocation4 + $0x140] ss:$8 sps:$4 sm:$0xff]   ;;  %v2765_v25 = vld [vmem:[#allocation4 + $0x134] ss:$8 sps:$4 sm:$0xff]  }
 0x19c   : > { %1259 = vmatprep.subr.bf16.mxu0 %v2678_v26  ;;  %v2748_v26 = vld [vmem:[#allocation4 + $0x80] ss:$8 sps:$4 sm:$0xff]  }
 0x19e   : > { %1217 = vmatpush1.bf16.msra.mxu1 %v2673_v30  ;;  %v2763_v30 = vld [vmem:[#allocation4 + $0x130] ss:$8 sps:$4 sm:$0xff]  }
 0x19f   : > { %1260 = vmatpush1.bf16.msra.mxu0 %v2676_v32  ;;  %1218 = vmatprep.subr.bf16.mxu1 %v2681_v33  ;;  %v2768_v32 = vld [vmem:[#allocation4 + $0x124] ss:$8 sps:$4 sm:$0xff]   ;;  %v2766_v33 = vld [vmem:[#allocation4 + $0x120] ss:$8 sps:$4 sm:$0xff]  }
 0x1a0   : > { %1738 = vmatprep.subr.bf16.mxu0 %v2705_v34  ;;  %v2771_v34 = vld [vmem:[#allocation4 + $0x114] ss:$8 sps:$4 sm:$0xff]  }
 0x1a2   : > { %1219 = vmatpush2.bf16.msra.mxu1 %v2679_v38  ;;  %1278 = vmatmul.mubr.bf16.vlgmr.msra.gmra.mxu0 %v3135_v63  ;;  %v2721_v63 = vld [vmem:[#allocation4 + $0x10] ss:$8 sps:$4 sm:$0xff]  }
 0x1a3   : > { %1220 = vmatprep.subr.bf16.mxu1 %v2684_v39  ;;  %1739 = vmatpush1.bf16.msra.mxu0 %v2703_v40  ;;  %v2769_v38 = vld [vmem:[#allocation4 + $0x110] ss:$8 sps:$4 sm:$0xff]   ;;  %v2774_v39 = vld [vmem:[#allocation4 + $0x104] ss:$8 sps:$4 sm:$0xff]   ;;  %v2772_v40 = vld [vmem:[#allocation4 + $0x100] ss:$8 sps:$4 sm:$0xff]  }
 0x1a4   : > { %1740 = vmatprep.subr.bf16.mxu0 %v2708_v41  ;;  %v2777_v41 = vld [vmem:[#allocation4 + $0x1f4] ss:$8 sps:$4 sm:$0xff]  }
 0x1a6   : > { %1221 = vmatpush2.bf16.msra.mxu1 %v2682_v42  ;;  %v2775_v42 = vld [vmem:[#allocation4 + $0x1f0] ss:$8 sps:$4 sm:$0xff]  }
 0x1a7   : > { %1222 = vmatprep.subr.bf16.mxu1 %v2687_v46  ;;  %1741 = vmatpush1.bf16.msra.mxu0 %v2706_v47  ;;  %v2780_v46 = vld [vmem:[#allocation4 + $0x1e4] ss:$8 sps:$4 sm:$0xff]   ;;  %v2778_v47 = vld [vmem:[#allocation4 + $0x1e0] ss:$8 sps:$4 sm:$0xff]  }
 0x1a8   : > { %1742 = vmatprep.subr.bf16.mxu0 %v2711_v48  ;;  %v2783_v48 = vld [vmem:[#allocation4 + $0x1d4] ss:$8 sps:$4 sm:$0xff]  }
 0x1aa   : > { %1223 = vmatpush2.bf16.msra.mxu1 %v2685_v36  ;;  %v2781_v36 = vld [vmem:[#allocation4 + $0x1d0] ss:$8 sps:$4 sm:$0xff]  }
 0x1ab   : > { %1224 = vmatprep.subr.bf16.mxu1 %v2690_v49  ;;  %1743 = vmatpush1.bf16.msra.mxu0 %v2709_v50  ;;  %v2786_v49 = vld [vmem:[#allocation4 + $0x1c4] ss:$8 sps:$4 sm:$0xff]   ;;  %v2784_v50 = vld [vmem:[#allocation4 + $0x1c0] ss:$8 sps:$4 sm:$0xff]  }
 0x1ac   : > { %1744 = vmatprep.subr.bf16.mxu0 %v2714_v51  ;;  %v2789_v51 = vld [vmem:[#allocation4 + $0x1b4] ss:$8 sps:$4 sm:$0xff]  }
 0x1ae   : > { %1225 = vmatpush2.bf16.msra.mxu1 %v2688_v52  ;;  %v2787_v52 = vld [vmem:[#allocation4 + $0x1b0] ss:$8 sps:$4 sm:$0xff]  }
 0x1af   : > { %1226 = vmatprep.subr.bf16.mxu1 %v2693_v37  ;;  %1745 = vmatpush1.bf16.msra.mxu0 %v2712_v53  ;;  %v2792_v37 = vld [vmem:[#allocation4 + $0x1a4] ss:$8 sps:$4 sm:$0xff]   ;;  %v2790_v53 = vld [vmem:[#allocation4 + $0x1a0] ss:$8 sps:$4 sm:$0xff]  }
 0x1b0   : > { %1746 = vmatprep.subr.bf16.mxu0 %v2717_v54  ;;  %v2795_v54 = vld [vmem:[#allocation4 + $0x194] ss:$8 sps:$4 sm:$0xff]  }
 0x1b2   : > { %1227 = vmatpush2.bf16.msra.mxu1 %v2691_v35  ;;  %v2793_v35 = vld [vmem:[#allocation4 + $0x190] ss:$8 sps:$4 sm:$0xff]  }
 0x1b3   : > { %1228 = vmatprep.subr.bf16.mxu1 %v2696_v55  ;;  %1747 = vmatpush1.bf16.msra.mxu0 %v2715_v56  ;;  %v2798_v55 = vld [vmem:[#allocation4 + $0x184] ss:$8 sps:$4 sm:$0xff]   ;;  %v2796_v56 = vld [vmem:[#allocation4 + $0x180] ss:$8 sps:$4 sm:$0xff]  }
 0x1b4   : > { %1748 = vmatprep.subr.bf16.mxu0 %v2720_v57  ;;  %v1292_v57 = vld [vmem:[%s3235_s4] sm:$0xf] }
 0x1b6   : > { %1229 = vmatpush2.bf16.msra.mxu1 %v2694_v58  ;;  %v1297_v58 = vrot.slane %v1292_v57, %v3118_v31 }
 0x1b7   : > { %1230 = vmatprep.subr.bf16.mxu1 %v2699_v59  ;;  %1749 = vmatpush1.bf16.msra.mxu0 %v2718_v60  ;;  %v1301_v59 = vrot.slane %v1292_v57, %v3109_v28 }
 0x1b8   : > { %1750 = vmatprep.subr.bf16.mxu0 %v2723_v61  ;;  %v1314_v60 = vpack.c.bf16 %v1297_v58, %v1297_v58  ;;  %v2807_v58 = vld [vmem:[%s3238_s7 + $0x58] sm:$0xff]  }
 0x1ba   : > { %1231 = vmatpush2.bf16.msra.mxu1 %v2697_v62  ;;  %v1315_v62 = vpack.c.bf16 %v1301_v59, %v1301_v59  ;;  %v2808_v59 = vld [vmem:[%s3238_s7 + $0x18] sm:$0xff]  }
 0x1bb   : > { %1232 = vmatprep.subr.bf16.mxu1 %v2702_v44  ;;  %1751 = vmatpush1.bf16.msra.mxu0 %v2721_v63 }
 0x1bc   : > { %1752 = vmatprep.subr.bf16.mxu0 %v2726_v45 }
 0x1be   : > { %1233 = vmatpush2.bf16.msra.mxu1 %v2700_v43  ;;  %v1319_v43 = vpack.i.b16 %v1314_v60, %v1314_v60  ;;  %v2809_v60 = vld [vmem:[%s3238_s7 + $0x50] sm:$0xff]  }
 0x1bf   : > { %1753 = vmatpush1.bf16.msra.mxu0 %v2724_v1  ;;  %1781 = vmatprep.subr.bf16.mxu1 %v2753_v13 }
 0x1c0   : > { %1754 = vmatprep.subr.bf16.mxu0 %v2729_v2  ;;  %v1326_v2 = vpack.i.b16 %v1315_v62, %v1315_v62  ;;  %v2811_v62 = vld [vmem:[%s3238_s7 + $0x48] sm:$0xff]  }
 0x1c1   : > { %1235 = vmatmul.mubr.bf16.vlgmr.msra.gmra.mxu1 %v3137_v0  ;;  %v2754_v0 = vld [vmem:[#allocation4 + $0x160] ss:$8 sps:$4 sm:$0xff]  }
 0x1c2   : > { %1782 = vmatpush1.bf16.msra.mxu1 %v2751_v12  ;;  %v1331_v13 = vrot.slane %v1326_v2, %v3118_v31  ;;  %v2816_v2 = vld [vmem:[#allocation6 + $0x30] sm:$0xff]  }
 0x1c3   : > { %1755 = vmatpush2.bf16.msra.mxu0 %v2727_v3  ;;  %1783 = vmatprep.subr.bf16.mxu1 %v2756_v16 }
 0x1c4   : > { %1756 = vmatprep.subr.bf16.mxu0 %v2732_v4 }
 0x1c6   : > { %1784 = vmatpush1.bf16.msra.mxu1 %v2754_v0 }
 0x1c7   : > { %1757 = vmatpush2.bf16.msra.mxu0 %v2730_v5  ;;  %1785 = vmatprep.subr.bf16.mxu1 %v2759_v18  ;;  %v1308_v18 = vsub.s32 3, %v3106_v27 }
 0x1c8   : > { %1758 = vmatprep.subr.bf16.mxu0 %v2735_v6 }
 0x1ca   : > { %1786 = vmatpush1.bf16.msra.mxu1 %v2757_v20  ;;  %v1305_v20 = vrot.slane %v1292_v57, %v3112_v29 }
 0x1cb   : > { %1759 = vmatpush2.bf16.msra.mxu0 %v2733_v7  ;;  %1787 = vmatprep.subr.bf16.mxu1 %v2762_v21  ;;  %v1324_v7 = vrot.slane %v1319_v43, %v3118_v31  ;;  %v1309_v21 = vrot.slane %v1292_v57, %v1308_v18  ;;  %v2806_v57 = vld [vmem:[%s3238_s7 + $0x20] sm:$0xff]   ;;  %v2815_v43 = vld [vmem:[#allocation6 + $0x38] sm:$0xff]  }
 0x1cc   : > { %1760 = vmatprep.subr.bf16.mxu0 %v2738_v8 }
 0x1ce   : > { %1788 = vmatpush1.bf16.msra.mxu1 %v2760_v24  ;;  %v1317_v24 = vpack.c.bf16 %v1309_v21, %v1309_v21 }
 0x1cf   : > { %1761 = vmatpush2.bf16.msra.mxu0 %v2736_v9  ;;  %1789 = vmatprep.subr.bf16.mxu1 %v2765_v25 }
 0x1d0   : > { %1762 = vmatprep.subr.bf16.mxu0 %v2741_v10 }
 0x1d2   : > { %1790 = vmatpush1.bf16.msra.mxu1 %v2763_v30 }
 0x1d3   : > { %1763 = vmatpush2.bf16.msra.mxu0 %v2739_v14  ;;  %1791 = vmatprep.subr.bf16.mxu1 %v2768_v32 }
 0x1d4   : > { %1764 = vmatprep.subr.bf16.mxu0 %v2744_v15 }
 0x1d6   : > { %1792 = vmatpush1.bf16.msra.mxu1 %v2766_v33  ;;  %v1340_v33 = vpack.i.b16 %v1317_v24, %v1317_v24 }
 0x1d7   : > { %1765 = vmatpush2.bf16.msra.mxu0 %v2742_v17  ;;  %1793 = vmatprep.subr.bf16.mxu1 %v2771_v34 }
 0x1d8   : > { %1766 = vmatprep.subr.bf16.mxu0 %v2747_v19  ;;  %v1345_v29 = vrot.slane %v1340_v33, %v3118_v31 }
 0x1da   : > { %1794 = vmatpush1.bf16.msra.mxu1 %v2769_v38 }
 0x1db   : > { %1767 = vmatpush2.bf16.msra.mxu0 %v2745_v22  ;;  %1795 = vmatprep.subr.bf16.mxu1 %v2774_v39 }
 0x1dc   : > { %1768 = vmatprep.subr.bf16.mxu0 %v2750_v23  ;;  %v1316_v23 = vpack.c.bf16 %v1305_v20, %v1305_v20 }
 0x1de   : > { %1796 = vmatpush1.bf16.msra.mxu1 %v2772_v40  ;;  %v1333_v32 = vpack.i.b16 %v1316_v23, %v1316_v23 }
 0x1df   : > { %1769 = vmatpush2.bf16.msra.mxu0 %v2748_v26  ;;  %1797 = vmatprep.subr.bf16.mxu1 %v2777_v41 }
 0x1e0   : > { %v1338_v41 = vrot.slane %v1333_v32, %v3118_v31 }
 0x1e2   : > { %1798 = vmatpush2.bf16.msra.mxu1 %v2775_v42 }
 0x1e3   : > { %1799 = vmatprep.subr.bf16.mxu1 %v2780_v46 }
 0x1e6   : > { %1800 = vmatpush2.bf16.msra.mxu1 %v2778_v47 }
 0x1e7   : > { %1801 = vmatprep.subr.bf16.mxu1 %v2783_v48 }
 0x1ea   : > { %1802 = vmatpush2.bf16.msra.mxu1 %v2781_v36 }
 0x1eb   : > { %1803 = vmatprep.subr.bf16.mxu1 %v2786_v49 }
 0x1ee   : > { %1804 = vmatpush2.bf16.msra.mxu1 %v2784_v50 }
 0x1ef   : > { %1805 = vmatprep.subr.bf16.mxu1 %v2789_v51 }
 0x1f2   : > { %1806 = vmatpush2.bf16.msra.mxu1 %v2787_v52  ;;  %v2799_v52 = vld [vmem:[%s3238_s7 + $0x78] sm:$0xff]  }
 0x1f3   : > { %1807 = vmatprep.subr.bf16.mxu1 %v2792_v37  ;;  %v2800_v37 = vld [vmem:[%s3238_s7 + $0x38] sm:$0xff]   ;;  %2459 = vmatprep.subr.bf16.mxu0 %v2799_v52 }
 0x1f6   : > { %1808 = vmatpush2.bf16.msra.mxu1 %v2790_v53  ;;  %v2801_v53 = vld [vmem:[%s3238_s7 + $0x70] sm:$0xff]  }
 0x1f7   : > { %1809 = vmatprep.subr.bf16.mxu1 %v2795_v54  ;;  %v2802_v54 = vld [vmem:[%s3238_s7 + $0x30] sm:$0xff]  }
 0x1fa   : > { %1810 = vmatpush2.bf16.msra.mxu1 %v2793_v35  ;;  %v2803_v35 = vld [vmem:[%s3238_s7 + $0x68] sm:$0xff]  }
 0x1fb   : > { %1811 = vmatprep.subr.bf16.mxu1 %v2798_v55  ;;  %v2804_v55 = vld [vmem:[%s3238_s7 + $0x28] sm:$0xff]  }
 0x1fe   : > { %1812 = vmatpush2.bf16.msra.mxu1 %v2796_v56  ;;  %v2805_v56 = vld [vmem:[%s3238_s7 + $0x60] sm:$0xff]  }
 0x241   : > { %v1193_v61 = vpop.f32.mrf.mxu1 }
 0x242   : > { %v1150_v44 = vpop.f32.mrf.mxu0 }
 0x243   : > { %v1195_v63 = vpop.f32.mrf.mxu1  ;;  %v1194_v4 = vadd.f32 %v1193_v61, %v1150_v44  ;;  %v2810_v61 = vld [vmem:[%s3238_s7 + $0x10] sm:$0xff]   ;;  %v2812_v44 = vld [vmem:[%s3238_s7 + $0x8] sm:$0xff]  }
 0x244   : > { %v1152_v45 = vpop.f32.mrf.mxu0 }
 0x245   : > { %v1197_v1 = vpop.f32.mrf.mxu1  ;;  %v1196_v9 = vadd.f32 %v1195_v63, %v1152_v45  ;;  %v2813_v63 = vld [vmem:[%s3238_s7 + $0x40] sm:$0xff]  }
 0x246   : > { %v1154_v3 = vpop.f32.mrf.mxu0  ;;  %v2814_v45 = vld [vmem:[%s3238_s7] sm:$0xff]  }
 0x247   : > { %v1198_v5 = vadd.f32 %v1197_v1, %v1154_v3  ;;  %v1199_v6 = vpop.f32.mrf.mxu1  ;;  %v2931_v1 = vmov 0.0   ;;  %v2817_v3 = vld [vmem:[#allocation6 + $0x28] sm:$0xff]  }
 0x248   : > { %v1156_v8 = vpop.f32.mrf.mxu0  ;;  %2490 = vmatprep.subr.bf16.mxu1 %v2931_v1 }
 0x249   : > { %v1288_v10 = vpack.c.bf16 %v1198_v5, %v1194_v4  ;;  %v1200_v12 = vadd.f32 %v1199_v6, %v1156_v8  ;;  %v2818_v4 = vld [vmem:[#allocation6 + $0x20] sm:$0xff]  }
 0x24a   : > { %v1826_v5 = vld [vmem:[%s3237_s6] sm:$0x3] }
 0x24b   : > { %v1289_v14 = vpack.c.bf16 %v1200_v12, %v1196_v9  ;;  %v1346_v15 = vadd.bf16 %v1324_v7, %v1288_v10  ;;  %v1831_v7 = vrot.slane %v1826_v5, %v3118_v31  ;;  %v1835_v8 = vrot.slane %v1826_v5, %v3109_v28 }
 0x24d   : > { %v1347_v0 = vadd.bf16 %v1331_v13, %v1289_v14  ;;  %v1350_v17 = vmax.bf16 %v2930_v11, %v1346_v15  ;;  %v1838_v10 = vpack.c.bf16 %v1831_v7, %v1831_v7  ;;  %v1839_v12 = vpack.c.bf16 %v1835_v8, %v1835_v8 }
 0x24f   : > { %v1351_v16 = vmax.bf16 %v2930_v11, %v1347_v0  ;;  %v1841_v0 = vpack.i.b16 %v1838_v10, %v1838_v10 }
 0x251   : > { %1770 = vmatprep.mubr.bf16.mxu0 %v1351_v16  ;;  %v1848_v16 = vpack.i.b16 %v1839_v12, %v1839_v12  ;;  %v1846_v21 = vrot.slane %v1841_v0, %v3118_v31 }
 0x252   : > { %1771 = vmatmul.mubr.bf16.vlgmr.msra.gmra.mxu0 %v1350_v17 }
 0x253   : > { %2460 = vmatpush3.bf16.msra.mxu0 %v2800_v37  ;;  %v1853_v28 = vrot.slane %v1848_v16, %v3118_v31 }
 0x254   : > { %2461 = vmatprep.subr.bf16.mxu0 %v2801_v53 }
 0x257   : > { %2462 = vmatpush3.bf16.msra.mxu0 %v2802_v54 }
 0x258   : > { %2463 = vmatprep.subr.bf16.mxu0 %v2803_v35  ;;  %v2439_v35 = vld [vmem:[%s3241_s10] ss:$0 sm:$0xff] }
 0x25b   : > { %2464 = vmatpush3.bf16.msra.mxu0 %v2804_v55 }
 0x25c   : > { %2465 = vmatprep.subr.bf16.mxu0 %v2805_v56 }
 0x25f   : > { %2466 = vmatpush3.bf16.msra.mxu0 %v2806_v57 }
 0x260   : > { %2467 = vmatprep.subr.bf16.mxu0 %v2807_v58 }
 0x262   : > { %v1279_v19 = vpop.f32.mrf.mxu0 }
 0x263   : > { %2468 = vmatpush3.bf16.msra.mxu0 %v2808_v59 }
 0x264   : > { %v1281_v22 = vpop.f32.mrf.mxu0  ;;  %2469 = vmatprep.subr.bf16.mxu0 %v2809_v60 }
 0x266   : > { %v1283_v26 = vpop.f32.mrf.mxu0 }
 0x267   : > { %2470 = vmatpush3.bf16.msra.mxu0 %v2810_v61 }
 0x268   : > { %v1285_v40 = vpop.f32.mrf.mxu0  ;;  %2471 = vmatprep.subr.bf16.mxu0 %v2811_v62 }
 0x26b   : > { %2472 = vmatpush3.bf16.msra.mxu0 %v2812_v44 }
 0x26c   : > { %2473 = vmatprep.subr.bf16.mxu0 %v2813_v63 }
 0x26f   : > { %2474 = vmatpush3.bf16.msra.mxu0 %v2814_v45 }
 0x281   : > { %v1236_v25 = vpop.f32.mrf.mxu1 }
 0x282   : > { %v1280_v38 = vadd.f32 %v1279_v19, %v1236_v25 }
 0x283   : > { %v1238_v30 = vpop.f32.mrf.mxu1 }
 0x284   : > { %v1282_v27 = vadd.f32 %v1281_v22, %v1238_v30 }
 0x285   : > { %v1240_v34 = vpop.f32.mrf.mxu1 }
 0x286   : > { %v1284_v39 = vadd.f32 %v1283_v26, %v1240_v34 }
 0x287   : > { %v1242_v42 = vpop.f32.mrf.mxu1 }
 0x288   : > { %v1290_v46 = vpack.c.bf16 %v1284_v39, %v1280_v38  ;;  %v1286_v47 = vadd.f32 %v1285_v40, %v1242_v42  ;;  %v2819_v38 = vld [vmem:[#allocation6 + $0x18] sm:$0xff]   ;;  %v2820_v39 = vld [vmem:[#allocation6 + $0x10] sm:$0xff]   ;;  %v2821_v40 = vld [vmem:[#allocation6 + $0x8] sm:$0xff]  }
 0x289   : > { %v2028_v42 = vld [vmem:[%s3239_s8] sm:$0x1] }
 0x28a   : > { %v1291_v48 = vpack.c.bf16 %v1286_v47, %v1282_v27  ;;  %v1348_v36 = vadd.bf16 %v1338_v41, %v1290_v46  ;;  %v2822_v41 = vld [vmem:[#allocation6] sm:$0xff]   ;;  %v2029_v27 = vpack.c.bf16 %v2028_v42, %v2028_v42 }
 0x28c   : > { %v1349_v49 = vadd.bf16 %v1345_v29, %v1291_v48  ;;  %v1352_v51 = vmax.bf16 %v2930_v11, %v1348_v36  ;;  %v2031_v29 = vpack.i.b16 %v2029_v27, %v2029_v27 }
 0x28e   : > { %v1353_v50 = vmax.bf16 %v2930_v11, %v1349_v49 }
 0x290   : > { %1813 = vmatprep.mubr.bf16.mxu1 %v1353_v50 }
 0x291   : > { %1814 = vmatmul.mubr.bf16.vlgmr.msra.gmra.mxu1 %v1352_v51  ;;  %v2036_v51 = vrot.slane %v2031_v29, %v3118_v31 }
 0x292   : > { %2491 = vmatpush3.bf16.msra.mxu1 %v2815_v43  ;;  %2506 = vmatprep.mubr.msk.bf16.mxu1 %vm2932_vm0, %v2931_v1 }
 0x293   : > { %2492 = vmatprep.subr.bf16.mxu1 %v2931_v1 }
 0x296   : > { %2493 = vmatpush3.bf16.msra.mxu1 %v2816_v2 }
 0x297   : > { %2494 = vmatprep.subr.bf16.mxu1 %v2931_v1 }
 0x29a   : > { %2495 = vmatpush3.bf16.msra.mxu1 %v2817_v3 }
 0x29b   : > { %2496 = vmatprep.subr.bf16.mxu1 %v2931_v1 }
 0x29e   : > { %2497 = vmatpush3.bf16.msra.mxu1 %v2818_v4 }
 0x29f   : > { %2498 = vmatprep.subr.bf16.mxu1 %v2931_v1 }
 0x2a2   : > { %2499 = vmatpush3.bf16.msra.mxu1 %v2819_v38 }
 0x2a3   : > { %2500 = vmatprep.subr.bf16.mxu1 %v2931_v1 }
 0x2a6   : > { %2501 = vmatpush3.bf16.msra.mxu1 %v2820_v39 }
 0x2a7   : > { %2502 = vmatprep.subr.bf16.mxu1 %v2931_v1 }
 0x2aa   : > { %2503 = vmatpush3.bf16.msra.mxu1 %v2821_v40 }
 0x2ab   : > { %2504 = vmatprep.subr.bf16.mxu1 %v2931_v1 }
 0x2ae   : > { %2505 = vmatpush3.bf16.msra.mxu1 %v2822_v41 }
 0x312   : > { %v1772_v6 = vpop.f32.mrf.mxu0 }
 0x314   : > { %v1774_v9 = vpop.f32.mrf.mxu0 }
 0x316   : > { %v1776_v14 = vpop.f32.mrf.mxu0 }
 0x318   : > { %v1778_v20 = vpop.f32.mrf.mxu0 }
 0x351   : > { %v1815_v13 = vpop.f32.mrf.mxu1 }
 0x352   : > { %v1816_v18 = vadd.f32 %v1815_v13, %v1772_v6 }
 0x353   : > { %v1817_v15 = vpop.f32.mrf.mxu1 }
 0x354   : > { %v1818_v23 = vadd.f32 %v1817_v15, %v1774_v9 }
 0x355   : > { %v1819_v17 = vpop.f32.mrf.mxu1 }
 0x356   : > { %v1820_v19 = vadd.f32 %v1819_v17, %v1776_v14 }
 0x357   : > { %v1821_v22 = vpop.f32.mrf.mxu1 }
 0x358   : > { %v1824_v24 = vpack.c.bf16 %v1820_v19, %v1816_v18  ;;  %v1822_v25 = vadd.f32 %v1821_v22, %v1778_v20 }
 0x35a   : > { %v1825_v26 = vpack.c.bf16 %v1822_v25, %v1818_v23  ;;  %v1854_v30 = vadd.bf16 %v1846_v21, %v1824_v24 }
 0x35c   : > { %v1855_v32 = vadd.bf16 %v1853_v28, %v1825_v26  ;;  %v1856_v34 = vmax.bf16 %v2930_v11, %v1854_v30 }
 0x35e   : > { %v1857_v33 = vmax.bf16 %v2930_v11, %v1855_v32 }
 0x360   : > { %2018 = vmatprep.mubr.bf16.mxu0 %v1857_v33 }
 0x361   : > { %2019 = vmatmul.mubr.bf16.vlgmr.msra.gmra.mxu0 %v1856_v34 }
 0x421   : > { %v2475_v46 = vpop.f32.mrf.mxu0 }
 0x423   : > { %v2476_v47 = vpop.f32.mrf.mxu0 }
 0x424   : > { %v2477_v49 = vadd.f32 %v2476_v47, %v2475_v46 }
 0x425   : > { %v2478_v48 = vpop.f32.mrf.mxu0 }
 0x427   : > { %v2479_v36 = vpop.f32.mrf.mxu0 }
 0x428   : > { %v2480_v50 = vadd.f32 %v2479_v36, %v2478_v48 }
 0x42a   : > { %v2027_v52 = vpack.c.bf16 %v2480_v50, %v2477_v49 }
 0x42c   : > { %v2037_v37 = vadd.bf16 %v2036_v51, %v2027_v52 }
 0x42e   : > { %v2038_v53 = vmax.bf16 %v2930_v11, %v2037_v37 }
 0x430   : > { %2507 = vmatmul.mubr.bf16.vlgmr.msra.gmra.mxu1 %v2038_v53 }
 0x4f0   : > { %v2144_v54 = vpop.f32.mrf.mxu1 }
 0x4f1   : > { %v2145_v57 = vadd.f32 %v2439_v35, %v2144_v54 }
 0x4f2   : > { %v2508_v55 = vpop.f32.mrf.mxu1 }
 0x4f4   : > { %v2147_v56 = vpop.f32.mrf.mxu1 }
 0x4f5   : > { %v2148_v58 = vadd.f32 %v2439_v35, %v2147_v56 }
 0x4f6   : > { %v2509_v31 = vpop.f32.mrf.mxu1 }
 0x4f7   : > { %v2457_v59 = vpack.c.bf16 %v2148_v58, %v2145_v57 }
 0x4f9   : > { %2458 = vst [vmem:[%s435_s22] sm:$0xff] %v2457_v59  }
 0x4fa PF: > { %s23_s17 = sadd.s32 1, %s2919_s17  }
 0x4fb   : > { %p20_p2 = scmp.ge.s32.totalorder %s23_s17, 4  }
 0x4fd   :  { %22 = sbr.rel (!%p20_p2) target bundleno = 2 (0x2), region = 107 }
 0x502   :  { %2183 = vsyncpa [#allocation3], 1 }
 0x503   :  { %2185 = vsyncpa [#allocation3 + $0x1], 1 }
 0x504   :  { %2186 = vsyncpa [#allocation5], 1 }

</bundles_post_ra>
